<compile_context>
chip_gen: v5e
topology: v5e:2x2
jax: 0.10.0
libtpu: 0.0.40
codegen_flags: <defaults>
</compile_context>

<pallas_src>
import math

import jax
import jax.numpy as jnp
from jax.experimental import pallas as pl
from jax.experimental.pallas import tpu as pltpu

EPSILON = 1e-6
LANES = 128


def _round_up(x, m):
    return ((x + m - 1) // m) * m


def _dsc_partial_kernel(pred_ref, target_ref, inter_ref, den_ref):
    """Accumulate per-batch partial sums for one (B, tile_rows, 128) chunk.

    pred_ref / target_ref : (B, TR, 128) input tiles (auto double-buffered).
    inter_ref / den_ref   : (1, B, 128) resident accumulator blocks (same block
                            index for every step along the reduction axis).
    """
    c = pl.program_id(1)  # position along the reduction (feature-chunk) axis

    @pl.when(c == 0)
    def _init():
        inter_ref[...] = jnp.zeros_like(inter_ref)
        den_ref[...] = jnp.zeros_like(den_ref)

    p = pred_ref[...].astype(jnp.float32)   # (B, TR, 128)
    t = target_ref[...].astype(jnp.float32)

    # Sublane-direction partial reduce per chunk; the cross-lane (XLU) reduce
    # is deferred to the epilogue.  Denominator built from running sums of p
    # and t -- no (p + t) temporary.
    inter_ref[0] += jnp.sum(p * t, axis=1)                    # (B, 128)
    den_ref[0] += jnp.sum(p, axis=1) + jnp.sum(t, axis=1)     # (B, 128)


def dsc_loss(pred, target, *, tile_rows=512, num_parallel=2):
    """Pallas implementation of DSC_loss.forward(pred, target) -> scalar.

    pred/target: identical shapes, leading dim = batch.  Any float dtype
    (pass bf16 to halve HBM bytes; accumulation is always f32).
    """
    assert pred.shape == target.shape
    b = pred.shape[0]
    n = math.prod(pred.shape[1:])
    rows = pl.cdiv(n, LANES)  # number of 128-lane rows per batch element

    # ---- tiling choice ----------------------------------------------------
    # Keep 2 inputs x 2 pipeline buffers of (B, tile_rows, 128) f32 under
    # ~8 MiB so double-buffering survives every generation's VMEM budget.
    max_tile_rows = max(8, ((8 * 1024 * 1024) // (4 * 4 * b * LANES)) // 8 * 8)
    tile_rows = min(tile_rows, max_tile_rows,
                    _round_up(pl.cdiv(rows, num_parallel), 8))
    tile_rows = _round_up(tile_rows, 8)
    rows_per_part = _round_up(pl.cdiv(rows, num_parallel), tile_rows)
    chunks = rows_per_part // tile_rows
    rows_padded = rows_per_part * num_parallel
    n_padded = rows_padded * LANES

    # ---- layout: (B, rows, 128) so tiles fill full (8, 128) vregs ----------
    pred2 = pred.reshape(b, n)      # row-major flatten == torch .view(B, -1)
    target2 = target.reshape(b, n)
    if n_padded != n:
        pad = ((0, 0), (0, n_padded - n))   # zero padding is DSC-neutral
        pred2 = jnp.pad(pred2, pad)
        target2 = jnp.pad(target2, pad)
    pred3 = pred2.reshape(b, rows_padded, LANES)
    target3 = target2.reshape(b, rows_padded, LANES)

    in_spec = pl.BlockSpec(
        (b, tile_rows, LANES),
        lambda pi, ci: (0, pi * chunks + ci, 0),
    )
    out_spec = pl.BlockSpec((1, b, LANES), lambda pi, ci: (pi, 0, 0))

    inter_parts, den_parts = pl.pallas_call(
        _dsc_partial_kernel,
        out_shape=(
            jax.ShapeDtypeStruct((num_parallel, b, LANES), jnp.float32),
            jax.ShapeDtypeStruct((num_parallel, b, LANES), jnp.float32),
        ),
        grid_spec=pltpu.PrefetchScalarGridSpec(
            num_scalar_prefetch=0,
            grid=(num_parallel, chunks),
            in_specs=[in_spec, in_spec],
            out_specs=[out_spec, out_spec],
        ),
        compiler_params=pltpu.CompilerParams(
            dimension_semantics=("parallel", "arbitrary"),
        ),
    )(pred3, target3)

    # Tiny epilogue (a few hundred floats): combine per-core partials,
    # cross-lane reduce, then the DSC ratio + batch mean.
    inter = jnp.sum(inter_parts, axis=(0, 2))   # (B,)
    den = jnp.sum(den_parts, axis=(0, 2))       # (B,)
    dsc = (2.0 * inter + EPSILON) / (den + EPSILON)
    return 1.0 - jnp.sum(dsc) / float(b)


def _reference_dsc_loss(pred, target):
    b = pred.shape[0]
    p = pred.reshape(b, -1).astype(jnp.float32)
    t = target.reshape(b, -1).astype(jnp.float32)
    dsc = (2.0 * jnp.sum(p * t, axis=1) + EPSILON) / (jnp.sum(p + t, axis=1) + EPSILON)
    return 1.0 - jnp.sum(dsc) / float(b)


if __name__ == "__main__":
    key = jax.random.PRNGKey(0)
    k1, k2 = jax.random.split(key)

    # Small NCHW shapes: batch=2, channels=4, spatial=16x16.
    pred = jax.random.uniform(k1, (2, 4, 16, 16), dtype=jnp.float32)
    target = (jax.random.uniform(k2, (2, 4, 16, 16)) > 0.5).astype(jnp.float32)

    loss = jax.block_until_ready(jax.jit(dsc_loss)(pred, target))
    ref = jax.block_until_ready(_reference_dsc_loss(pred, target))

    assert jnp.allclose(loss, ref, rtol=1e-5, atol=1e-6), (loss, ref)
    print("KERNEL_OK")
</pallas_src>

<mosaic_0001>
module attributes {stable_mosaic.version = 11 : i64} {
  func.func @_dsc_partial_kernel(%arg0: i32, %arg1: i32, %arg2: memref<2x8x128xf32, #tpu.memory_space<vmem>>, %arg3: memref<2x8x128xf32, #tpu.memory_space<vmem>>, %arg4: memref<1x2x128xf32, #tpu.memory_space<vmem>>, %arg5: memref<1x2x128xf32, #tpu.memory_space<vmem>>) attributes {dimension_semantics = [#tpu.dimension_semantics<parallel>, #tpu.dimension_semantics<arbitrary>], iteration_bounds = array<i64: 2, 1>, scalar_prefetch = 0 : i64, scratch_operands = 0 : i64, tpu.core_type = #tpu.core_type<tc>, window_params = [{transform_indices = @transform_0, window_bounds = array<i64: 2, 8, 128>}, {transform_indices = @transform_1, window_bounds = array<i64: 2, 8, 128>}, {transform_indices = @transform_2, window_bounds = array<i64: 1, 2, 128>}, {transform_indices = @transform_3, window_bounds = array<i64: 1, 2, 128>}]} {
    %c0_i32 = arith.constant 0 : i32
    %0 = arith.cmpi eq, %arg1, %c0_i32 : i32
    %1 = arith.extui %0 : i1 to i32
    %c0_i32_0 = arith.constant 0 : i32
    %2 = arith.cmpi ne, %1, %c0_i32_0 : i32
    scf.if %2 {
      %cst_20 = arith.constant 0.000000e+00 : f32
      %22 = vector.broadcast %cst_20 : f32 to vector<1x2x128xf32>
      %c0_21 = arith.constant 0 : index
      %c0_22 = arith.constant 0 : index
      %c0_23 = arith.constant 0 : index
      %23 = vector.load %arg4[%c0_21, %c0_22, %c0_23] : memref<1x2x128xf32, #tpu.memory_space<vmem>>, vector<1x2x128xf32>
      tpu.vector_store %arg4[%c0_21, %c0_22, %c0_23], %22 {strides = array<i32>} : memref<1x2x128xf32, #tpu.memory_space<vmem>>, vector<1x2x128xf32>,
      %cst_24 = arith.constant 0.000000e+00 : f32
      %24 = vector.broadcast %cst_24 : f32 to vector<1x2x128xf32>
      %c0_25 = arith.constant 0 : index
      %c0_26 = arith.constant 0 : index
      %c0_27 = arith.constant 0 : index
      %25 = vector.load %arg5[%c0_25, %c0_26, %c0_27] : memref<1x2x128xf32, #tpu.memory_space<vmem>>, vector<1x2x128xf32>
      tpu.vector_store %arg5[%c0_25, %c0_26, %c0_27], %24 {strides = array<i32>} : memref<1x2x128xf32, #tpu.memory_space<vmem>>, vector<1x2x128xf32>,
    } else {
    }
    %c0 = arith.constant 0 : index
    %c0_1 = arith.constant 0 : index
    %c0_2 = arith.constant 0 : index
    %3 = vector.load %arg2[%c0, %c0_1, %c0_2] : memref<2x8x128xf32, #tpu.memory_space<vmem>>, vector<2x8x128xf32>
    %c0_3 = arith.constant 0 : index
    %c0_4 = arith.constant 0 : index
    %c0_5 = arith.constant 0 : index
    %4 = vector.load %arg3[%c0_3, %c0_4, %c0_5] : memref<2x8x128xf32, #tpu.memory_space<vmem>>, vector<2x8x128xf32>
    %c0_6 = arith.constant 0 : index
    %c0_7 = arith.constant 0 : index
    %c0_8 = arith.constant 0 : index
    %5 = vector.load %arg4[%c0_6, %c0_7, %c0_8] : memref<1x2x128xf32, #tpu.memory_space<vmem>>, vector<1x2x128xf32>
    %6 = vector.shape_cast %5 : vector<1x2x128xf32> to vector<2x128xf32>
    %7 = arith.mulf %3, %4 : vector<2x8x128xf32>
    %cst = arith.constant dense<0.000000e+00> : vector<2x128xf32>
    %8 = vector.multi_reduction <add>, %7, %cst [1] : vector<2x8x128xf32> to vector<2x128xf32>
    %9 = arith.addf %6, %8 : vector<2x128xf32>
    %c0_9 = arith.constant 0 : index
    %c0_10 = arith.constant 0 : index
    %c0_11 = arith.constant 0 : index
    %10 = vector.load %arg4[%c0_9, %c0_10, %c0_11] : memref<1x2x128xf32, #tpu.memory_space<vmem>>, vector<1x2x128xf32>
    %11 = vector.shape_cast %10 : vector<1x2x128xf32> to vector<2x128xf32>
    %12 = vector.shape_cast %9 : vector<2x128xf32> to vector<1x2x128xf32>
    tpu.vector_store %arg4[%c0_9, %c0_10, %c0_11], %12 {strides = array<i32>} : memref<1x2x128xf32, #tpu.memory_space<vmem>>, vector<1x2x128xf32>,
    %c0_12 = arith.constant 0 : index
    %c0_13 = arith.constant 0 : index
    %c0_14 = arith.constant 0 : index
    %13 = vector.load %arg5[%c0_12, %c0_13, %c0_14] : memref<1x2x128xf32, #tpu.memory_space<vmem>>, vector<1x2x128xf32>
    %14 = vector.shape_cast %13 : vector<1x2x128xf32> to vector<2x128xf32>
    %cst_15 = arith.constant dense<0.000000e+00> : vector<2x128xf32>
    %15 = vector.multi_reduction <add>, %3, %cst_15 [1] : vector<2x8x128xf32> to vector<2x128xf32>
    %cst_16 = arith.constant dense<0.000000e+00> : vector<2x128xf32>
    %16 = vector.multi_reduction <add>, %4, %cst_16 [1] : vector<2x8x128xf32> to vector<2x128xf32>
    %17 = arith.addf %15, %16 : vector<2x128xf32>
    %18 = arith.addf %14, %17 : vector<2x128xf32>
    %c0_17 = arith.constant 0 : index
    %c0_18 = arith.constant 0 : index
    %c0_19 = arith.constant 0 : index
    %19 = vector.load %arg5[%c0_17, %c0_18, %c0_19] : memref<1x2x128xf32, #tpu.memory_space<vmem>>, vector<1x2x128xf32>
    %20 = vector.shape_cast %19 : vector<1x2x128xf32> to vector<2x128xf32>
    %21 = vector.shape_cast %18 : vector<2x128xf32> to vector<1x2x128xf32>
    tpu.vector_store %arg5[%c0_17, %c0_18, %c0_19], %21 {strides = array<i32>} : memref<1x2x128xf32, #tpu.memory_space<vmem>>, vector<1x2x128xf32>,
    return
  }
  func.func @transform_0(%arg0: i32, %arg1: i32) -> (i32, i32, i32) {
    %c1_i32 = arith.constant 1 : i32
    %0 = arith.muli %arg0, %c1_i32 : i32
    %1 = arith.addi %0, %arg1 : i32
    %c0_i32 = arith.constant 0 : i32
    %c0_i32_0 = arith.constant 0 : i32
    %c0_i32_1 = arith.constant 0 : i32
    return %c0_i32, %1, %c0_i32_0 : i32, i32, i32
  }
  func.func @transform_1(%arg0: i32, %arg1: i32) -> (i32, i32, i32) {
    %c1_i32 = arith.constant 1 : i32
    %0 = arith.muli %arg0, %c1_i32 : i32
    %1 = arith.addi %0, %arg1 : i32
    %c0_i32 = arith.constant 0 : i32
    %c0_i32_0 = arith.constant 0 : i32
    %c0_i32_1 = arith.constant 0 : i32
    return %c0_i32, %1, %c0_i32_0 : i32, i32, i32
  }
  func.func @transform_2(%arg0: i32, %arg1: i32) -> (i32, i32, i32) {
    %c0_i32 = arith.constant 0 : i32
    %c0_i32_0 = arith.constant 0 : i32
    %c0_i32_1 = arith.constant 0 : i32
    return %arg0, %c0_i32, %c0_i32_0 : i32, i32, i32
  }
  func.func @transform_3(%arg0: i32, %arg1: i32) -> (i32, i32, i32) {
    %c0_i32 = arith.constant 0 : i32
    %c0_i32_0 = arith.constant 0 : i32
    %c0_i32_1 = arith.constant 0 : i32
    return %arg0, %c0_i32, %c0_i32_0 : i32, i32, i32
  }
}

</mosaic_0001>

<bundles_post_ra>
// kernel: dsc_loss.1
= control target key start
LH: loop header
LB: loop body
LE: loop exit
PB: predicated region body
PF: predicated region fallthrough
CT: control target
= control target key end

     0   :  { %s598_s12 = smov 0   ;;  %s600_s13 = smov 0   ;;  %s690_s0 = inlined_call_operand.vmem [shape: f32[2,16,128], index: 0, kind: input, shape index: {}]   ;;  %s691_s1 = inlined_call_operand.vmem [shape: f32[2,16,128], index: 1, kind: input, shape index: {}]   ;;  %s692_s2 = inlined_call_operand.vmem [shape: f32[2,2,128], index: 2, kind: output, shape index: {0}]   ;;  %s693_s3 = inlined_call_operand.vmem [shape: f32[2,2,128], index: 3, kind: output, shape index: {1}]  }
   0x1   :  { %s602_s14 = smov 0   ;;  %s604_s15 = smov 0  }
   0x2   :  { %s606_s16 = smov 0  }
   0x3 LB: > { %s26_s17 = sadd.s32 1, %s571_s15  ;;  %p42_p1 = scmp.ne.s32.totalorder %s563_s13, %s559_s12  ;;  %s575_s16 = sphi %s606_s16, %s14_s16   ;;  %s571_s15 = sphi %s604_s15, %s698_s15   ;;  %s567_s14 = sphi %s602_s14, %s697_s14   ;;  %s563_s13 = sphi %s600_s13, %s696_s13   ;;  %s559_s12 = sphi %s598_s12, %s695_s12  }
   0x4   : > { %p28_p0 = scmp.ge.s32.totalorder %s26_s17, 2  ;;  %p43_p2 = scmp.eq.s32.totalorder %s575_s16, 0 }
   0x5   : > { %s35_s20 = sadd.s32 1, %s563_s13  ;;  %p484_p5 = scmp.ge.s32.totalorder %s575_s16, 2 }
   0x6   : > { %s700_s17 = smov (%p28_p0, %s26_s17), 0  ;;  %p629_p3 = por %p43_p2, %p42_p1 }
   0x7   : > { %s32_s19 = ssub.s32 %s571_s15, %s700_s17  ;;  %148 = sbr.rel (%p484_p5) target bundleno = 24 (0x18), region = 16 }
   0x8   : > { %p33_p4 = scmp.eq.s32.totalorder %s32_s19, 0 }
   0xa   : > { %s637_s21 = scalar_select %p33_p4, %s563_s13, %s35_s20  }
   0xc   : > { %151 = sbr.rel (!%p629_p3) target bundleno = 18 (0x12), region = 20  ;;  %s153_s22 = sand.u32 (%p629_p3), 1, %s563_s13  }
   0xd   : > { %s486_s23 = sshll.u32 (%p629_p3), %s571_s15, 3  ;;  %s485_s24 = sshll.u32 (%p629_p3), %s153_s22, 4 }
   0xe   : > { %s158_s27 = scalar_lea.vmem (%p629_p3), %s690_s0, %s486_s23  ;;  %s155_s28 = scalar_lea.vmem (%p629_p3), [#allocation2], %s485_s24 }
   0xf   : > { %v189_v0 = vld [vmem:[%s158_s27] sm:$0xff] (%p629_p3)  ;;  %v191_v1 = vld [vmem:[%s158_s27 + $0x10] sm:$0xff] (%p629_p3) }
  0x10   : > { %190 = vst [vmem:[%s155_s28] sm:$0xff] (%p629_p3), %v189_v0 }
  0x11   : > { %192 = vst [vmem:[%s155_s28 + $0x8] sm:$0xff] %v191_v1 }
  0x12 PF: > { %198 = sbr.rel (!%p629_p3) target bundleno = 24 (0x18), region = 58  ;;  %s200_s29 = sand.u32 (%p629_p3), 1, %s563_s13  }
  0x13   : > { %s488_s30 = sshll.u32 (%p629_p3), %s571_s15, 3  ;;  %s487_s4 = sshll.u32 (%p629_p3), %s200_s29, 4 }
  0x14   : > { %s205_s7 = scalar_lea.vmem (%p629_p3), %s691_s1, %s488_s30  ;;  %s202_s8 = scalar_lea.vmem (%p629_p3), [#allocation3], %s487_s4 }
  0x15   : > { %v236_v2 = vld [vmem:[%s205_s7] sm:$0xff] (%p629_p3)  ;;  %v238_v3 = vld [vmem:[%s205_s7 + $0x10] sm:$0xff] (%p629_p3) }
  0x16   : > { %237 = vst [vmem:[%s202_s8] sm:$0xff] (%p629_p3), %v236_v2 }
  0x17   : > { %239 = vst [vmem:[%s202_s8 + $0x8] sm:$0xff] %v238_v3 }
  0x18 PF: > { %p489_p6 = scmp.ge.s32.totalorder %s575_s16, 1  ;;  %p244_p7 = scmp.lt.s32.totalorder %s575_s16, 3 }
  0x1a   : > { %p245_p8 = pnand %p489_p6, %p244_p7 }
  0x1b   : > { %p290_p9 = scmp.lt.s32.totalorder (!%p245_p8), %s567_s14, 1  ;;  %s251_s9 = sand.u32 (!%p245_p8), 1, %s559_s12  }
  0x1c   : > { %248 = sbr.rel (%p245_p8) target bundleno = 54 (0x36), region = 96  ;;  %s490_s10 = sshll.u32 (!%p245_p8), %s251_s9, 4 }
  0x1d   : > { %s253_s18 = scalar_lea.vmem (!%p245_p8), [#allocation2], %s490_s10  ;;  %s260_s19 = scalar_lea.vmem (!%p245_p8), [#allocation3], %s490_s10 }
  0x21   : > { %s702_s14 = smov (!%p290_p9, %s567_s14), 1  ;;  %v304_v4 = vld [vmem:[%s253_s18] sm:$0xff]  ;;  %v305_v5 = vld [vmem:[%s253_s18 + $0x8] sm:$0xff]  ;;  %v577_v12 = vmov 0.0   ;;  %vm325_vm0 = vcmask 1041409  }
  0x22   : > { %s492_s11 = sshll.u32 %s702_s14, 1  ;;  %v306_v6 = vld [vmem:[%s260_s19] sm:$0xff]  ;;  %v307_v7 = vld [vmem:[%s260_s19 + $0x8] sm:$0xff]  ;;  %v331_v9 = vrot.slane %v304_v4, 4  ;;  %v337_v10 = vrot.slane %v305_v5, 4 }
  0x23   : > { %s662_s23 = scalar_lea.vmem %s692_s2, %s492_s11  ;;  %s667_s26 = scalar_lea.vmem %s693_s3, %s492_s11  ;;  %v309_v8 = vmul.f32 %v306_v6, %v304_v4  ;;  %v343_v11 = vrot.slane %v306_v6, 4  ;;  %v310_v13 = vmul.f32 %v307_v7, %v305_v5  ;;  %v349_v14 = vrot.slane %v307_v7, 4 }
  0x24   : > { %302 = vst [vmem:[%s662_s23] sm:$0x3] %v577_v12  ;;  %v332_v16 = vadd.f32 %v331_v9, %v304_v4  ;;  %v338_v17 = vadd.f32 %v337_v10, %v305_v5 }
  0x25   : > { %303 = vst [vmem:[%s667_s26] sm:$0x3] %v577_v12  ;;  %v311_v15 = vrot.slane %v309_v8, 4  ;;  %v344_v18 = vadd.f32 %v343_v11, %v306_v6  ;;  %v317_v19 = vrot.slane %v310_v13, 4  ;;  %v350_v20 = vadd.f32 %v349_v14, %v307_v7 }
  0x26   : > { %v333_v22 = vrot.slane %v332_v16, 2  ;;  %v339_v23 = vrot.slane %v338_v17, 2 }
  0x27   : > { %v312_v21 = vadd.f32 %v311_v15, %v309_v8  ;;  %v345_v24 = vrot.slane %v344_v18, 2  ;;  %v318_v25 = vadd.f32 %v317_v19, %v310_v13  ;;  %v351_v26 = vrot.slane %v350_v20, 2 }
  0x28   : > { %v334_v28 = vadd.f32 %v333_v22, %v332_v16  ;;  %v340_v29 = vadd.f32 %v339_v23, %v338_v17 }
  0x29   : > { %v313_v27 = vrot.slane %v312_v21, 2  ;;  %v346_v30 = vadd.f32 %v345_v24, %v344_v18  ;;  %v319_v31 = vrot.slane %v318_v25, 2  ;;  %v352_v32 = vadd.f32 %v351_v26, %v350_v20 }
  0x2a   : > { %v335_v34 = vrot.slane %v334_v28, 1  ;;  %v341_v35 = vrot.slane %v340_v29, 1 }
  0x2b   : > { %v314_v33 = vadd.f32 %v313_v27, %v312_v21  ;;  %v347_v36 = vrot.slane %v346_v30, 1  ;;  %v320_v37 = vadd.f32 %v319_v31, %v318_v25  ;;  %v353_v38 = vrot.slane %v352_v32, 1  ;;  %v308_v47 = vld [vmem:[%s662_s23] sm:$0x3] }
  0x2c   : > { %v336_v40 = vadd.f32 %v335_v34, %v334_v28  ;;  %v342_v41 = vadd.f32 %v341_v35, %v340_v29  ;;  %v330_v49 = vld [vmem:[%s667_s26] sm:$0x3] }
  0x2d   : > { %v315_v39 = vrot.slane %v314_v33, 1  ;;  %v348_v42 = vadd.f32 %v347_v36, %v346_v30  ;;  %v321_v43 = vrot.slane %v320_v37, 1  ;;  %v354_v44 = vadd.f32 %v353_v38, %v352_v32 }
  0x2f   : > { %v316_v45 = vadd.f32 %v315_v39, %v314_v33  ;;  %v355_v46 = vadd.f32 %v348_v42, %v336_v40  ;;  %v322_v48 = vadd.f32 %v321_v43, %v320_v37  ;;  %v356_v50 = vadd.f32 %v354_v44, %v342_v41 }
  0x31   : > { %v326_v51 = vsel %vm325_vm0, %v322_v48, %v316_v45  ;;  %v359_v52 = vsel %vm325_vm0, %v356_v50, %v355_v46 }
  0x32   : > { %v328_v53 = vadd.f32 %v326_v51, %v308_v47  ;;  %v361_v54 = vadd.f32 %v359_v52, %v330_v49 }
  0x34   : > { %329 = vst [vmem:[%s662_s23] sm:$0x3] %v328_v53 }
  0x35   : > { %362 = vst [vmem:[%s667_s26] sm:$0x3] %v361_v54 }
  0x36 PF: > { %s14_s16 = sadd.s32 1, %s575_s16   ;;  %s695_s12 = smov %s563_s13 }
  0x37   : > { %p11_p10 = scmp.ge.s32.totalorder %s14_s16, 4   ;;  %s696_s13 = smov %s637_s21 }
  0x38   : > { %s697_s14 = smov %s571_s15  ;;  %s698_s15 = smov %s700_s17 }
  0x39   :  { %13 = sbr.rel (!%p11_p10) target bundleno = 3 (0x3), region = 163 }

</bundles_post_ra>
